<compile_context>
chip_gen: v7x
topology: tpu7x:2x2x1
jax: 0.10.0
libtpu: 0.0.40
codegen_flags: <defaults>
</compile_context>

<pallas_src>
import jax
import jax.numpy as jnp
from jax.experimental import pallas as pl
from jax.experimental.pallas import tpu as pltpu

_VMEM_LIMIT = 32 * 1024 * 1024  # safe on v5e/v6e/v7x; working set is <= ~7 MiB


def _stable_softplus(x):
    # max(x,0) + log1p(exp(-|x|)) -- numerically stable softplus.
    return jnp.maximum(x, 0.0) + jnp.log1p(jnp.exp(-jnp.abs(x)))


def _sigmoid(x):
    # sigmoid via tanh (single EUP op), identical to 1/(1+exp(-x)).
    return 0.5 * (jnp.tanh(0.5 * x) + 1.0)


# --------------------------------------------------------------------------
# Pass 1 (multi-batch-tile path): elementwise weight transform.
# Emits e_w / var_w TRANSPOSED as (I_pad, O_pad) bf16 so the matmul pass uses a
# standard (m,k)x(k,n) contraction with no per-step weight transposes.
# --------------------------------------------------------------------------
def _weight_transform_kernel(wmu_ref, wrho_ref, lam_ref, ewt_ref, vwt_ref):
    wmu = wmu_ref[...]                       # (to, tk) f32
    wrho = wrho_ref[...]
    lam = lam_ref[...]

    alpha = _sigmoid(lam)
    w_sigma = _stable_softplus(wrho)
    e_w = wmu * alpha
    var_w = alpha * (w_sigma * w_sigma + (1.0 - alpha) * wmu * wmu)

    # One-time XLU transpose here, never in the matmul steady state.
    ewt_ref[...] = e_w.T.astype(ewt_ref.dtype)     # (tk, to) bf16
    vwt_ref[...] = var_w.T.astype(vwt_ref.dtype)   # (tk, to) bf16


# --------------------------------------------------------------------------
# Pass 2 (multi-batch-tile path): (B, O, K)-tiled double matmul, K last,
# two f32 VMEM accumulators, fused bias/sqrt/eps epilogue.
# --------------------------------------------------------------------------
def _bayes_matmul_kernel(x_ref, ewt_ref, vwt_ref, bmu_ref, bsig2_ref, eps_ref,
                         out_ref, eb_acc, vb_acc):
    k = pl.program_id(2)
    nk = pl.num_programs(2)

    @pl.when(k == 0)
    def _():
        eb_acc[...] = jnp.zeros_like(eb_acc)
        vb_acc[...] = jnp.zeros_like(vb_acc)

    x_bf = x_ref[...]                                            # (tb, tk) bf16
    xsq_bf = jnp.square(x_bf.astype(jnp.float32)).astype(jnp.bfloat16)

    eb_acc[...] += jnp.dot(x_bf, ewt_ref[...],
                           preferred_element_type=jnp.float32)
    vb_acc[...] += jnp.dot(xsq_bf, vwt_ref[...],
                           preferred_element_type=jnp.float32)

    @pl.when(k == nk - 1)
    def _():
        e_b = eb_acc[...] + bmu_ref[...]
        var_b = jnp.maximum(vb_acc[...] + bsig2_ref[...], 0.0)
        out_ref[...] = (e_b + jnp.sqrt(var_b) * eps_ref[...].astype(jnp.float32)
                        ).astype(out_ref.dtype)


# --------------------------------------------------------------------------
# Fused one-pass kernel (single batch tile): weight transform + matmuls +
# epilogue.  Each weight tile is visited exactly once, so the transform/
# transpose here costs the same as pass 1 would, but e_w / var_w never touch
# HBM (saves ~8 B/weight-element of write + re-read traffic).
# --------------------------------------------------------------------------
def _bayes_fused_kernel(x_ref, wmu_ref, wrho_ref, lam_ref, bmu_ref, bsig2_ref,
                        eps_ref, out_ref, eb_acc, vb_acc):
    k = pl.program_id(1)
    nk = pl.num_programs(1)

    @pl.when(k == 0)
    def _():
        eb_acc[...] = jnp.zeros_like(eb_acc)
        vb_acc[...] = jnp.zeros_like(vb_acc)

    wmu = wmu_ref[...]                       # (to, tk) f32
    wrho = wrho_ref[...]
    lam = lam_ref[...]
    alpha = _sigmoid(lam)
    w_sigma = _stable_softplus(wrho)
    e_w = wmu * alpha
    var_w = alpha * (w_sigma * w_sigma + (1.0 - alpha) * wmu * wmu)
    ewt = e_w.T.astype(jnp.bfloat16)         # (tk, to) -- transposed once
    vwt = var_w.T.astype(jnp.bfloat16)

    x_bf = x_ref[...]                        # (B_pad, tk) bf16
    xsq_bf = jnp.square(x_bf.astype(jnp.float32)).astype(jnp.bfloat16)

    eb_acc[...] += jnp.dot(x_bf, ewt, preferred_element_type=jnp.float32)
    vb_acc[...] += jnp.dot(xsq_bf, vwt, preferred_element_type=jnp.float32)

    @pl.when(k == nk - 1)
    def _():
        e_b = eb_acc[...] + bmu_ref[...]
        var_b = jnp.maximum(vb_acc[...] + bsig2_ref[...], 0.0)
        out_ref[...] = (e_b + jnp.sqrt(var_b) * eps_ref[...].astype(jnp.float32)
                        ).astype(out_ref.dtype)


# --------------------------------------------------------------------------
# Wrapper: padding, tiling, kernel dispatch
# --------------------------------------------------------------------------
def _round_up(x, m):
    return (x + m - 1) // m * m


def _prep2(a, rows, cols, dtype):
    """Cast + zero-pad to (rows, cols); both are no-ops when already aligned."""
    if a.dtype != dtype:
        a = a.astype(dtype)
    pr, pc = rows - a.shape[0], cols - a.shape[1]
    if pr or pc:
        a = jnp.pad(a, ((0, pr), (0, pc)))
    return a


@jax.jit
def bayesian_linear_forward(x, weight_mu, weight_rho, lambdal, bias_mu, bias_rho, eps):
    """x: (B, I); weight_*: (O, I); bias_*: (O,); eps: (B, O) -> (B, O) float32."""
    B, I = x.shape
    O = weight_mu.shape[0]

    # Tile sizes.  Batch tile grows with B (up to 512) to maximize weight reuse;
    # last-dim tiles are multiples of 128 (lane-dense, unmasked stores).
    tb = min(512, _round_up(B, 8))
    to = min(256, _round_up(O, 128))
    tk = min(512, _round_up(I, 128))
    B_pad = _round_up(B, tb)
    O_pad = _round_up(O, to)
    I_pad = _round_up(I, tk)

    single_batch_tile = (B_pad // tb == 1)
    # v7x has 2 TensorCores: when the whole batch is one tile, try to keep >=2
    # parallel output tiles so the second core is not idle.
    if single_batch_tile and (O_pad // to) < 2 and to >= 256:
        to //= 2  # O_pad was == to, so it stays a multiple of the new to

    f32, bf16 = jnp.float32, jnp.bfloat16

    # Activations / noise in bf16 (halves their re-streamed HBM bytes; they
    # enter the MXU as bf16 anyway).  Zero padding is preserved by the cast.
    x_p = _prep2(x, B_pad, I_pad, bf16)
    eps_p = _prep2(eps, B_pad, O_pad, bf16)

    # Weight params stay f32 (pass 1 / fused kernel compute in f32).
    wmu_p = _prep2(weight_mu, O_pad, I_pad, f32)
    wrho_p = _prep2(weight_rho, O_pad, I_pad, f32)
    lam_p = _prep2(lambdal, O_pad, I_pad, f32)

    # Hoisted bias terms: softplus done once here, not in every epilogue tile.
    bmu_p = _prep2(bias_mu.reshape(1, O), 1, O_pad, f32)
    b_sigma = jax.nn.softplus(bias_rho.astype(f32))
    bsig2_p = _prep2((b_sigma * b_sigma).reshape(1, O), 1, O_pad, f32)

    if single_batch_tile:
        # ---- Fused one-pass kernel: weights visited exactly once.
        out_p = pl.pallas_call(
            _bayes_fused_kernel,
            out_shape=jax.ShapeDtypeStruct((B_pad, O_pad), jnp.float32),
            grid=(O_pad // to, I_pad // tk),
            in_specs=[
                pl.BlockSpec((B_pad, tk), lambda o, k: (0, k)),   # x (bf16)
                pl.BlockSpec((to, tk), lambda o, k: (o, k)),      # weight_mu
                pl.BlockSpec((to, tk), lambda o, k: (o, k)),      # weight_rho
                pl.BlockSpec((to, tk), lambda o, k: (o, k)),      # lambdal
                pl.BlockSpec((1, to), lambda o, k: (0, o)),       # bias_mu
                pl.BlockSpec((1, to), lambda o, k: (0, o)),       # bias_sigma^2
                pl.BlockSpec((B_pad, to), lambda o, k: (0, o)),   # eps (bf16)
            ],
            out_specs=pl.BlockSpec((B_pad, to), lambda o, k: (0, o)),
            scratch_shapes=[pltpu.VMEM((B_pad, to), jnp.float32),   # e_b acc
                            pltpu.VMEM((B_pad, to), jnp.float32)],  # var_b acc
            compiler_params=pltpu.CompilerParams(
                dimension_semantics=("parallel", "arbitrary"),
                vmem_limit_bytes=_VMEM_LIMIT,
            ),
        )(x_p, wmu_p, wrho_p, lam_p, bmu_p, bsig2_p, eps_p)
    else:
        cparams_p1 = pltpu.CompilerParams(
            dimension_semantics=("parallel", "parallel"),
            vmem_limit_bytes=_VMEM_LIMIT,
        )
        # ---- Pass 1: weight transform, output transposed (I_pad, O_pad) bf16.
        e_w_t, var_w_t = pl.pallas_call(
            _weight_transform_kernel,
            out_shape=(jax.ShapeDtypeStruct((I_pad, O_pad), jnp.bfloat16),
                       jax.ShapeDtypeStruct((I_pad, O_pad), jnp.bfloat16)),
            grid=(O_pad // to, I_pad // tk),
            in_specs=[
                pl.BlockSpec((to, tk), lambda o, k: (o, k)),   # weight_mu
                pl.BlockSpec((to, tk), lambda o, k: (o, k)),   # weight_rho
                pl.BlockSpec((to, tk), lambda o, k: (o, k)),   # lambdal
            ],
            out_specs=(pl.BlockSpec((tk, to), lambda o, k: (k, o)),
                       pl.BlockSpec((tk, to), lambda o, k: (k, o))),
            compiler_params=cparams_p1,
        )(wmu_p, wrho_p, lam_p)

        # ---- Pass 2: tiled double matmul with f32 accumulators, fused epilogue.
        out_p = pl.pallas_call(
            _bayes_matmul_kernel,
            out_shape=jax.ShapeDtypeStruct((B_pad, O_pad), jnp.float32),
            grid=(B_pad // tb, O_pad // to, I_pad // tk),
            in_specs=[
                pl.BlockSpec((tb, tk), lambda b, o, k: (b, k)),   # x (bf16)
                pl.BlockSpec((tk, to), lambda b, o, k: (k, o)),   # e_w^T (bf16)
                pl.BlockSpec((tk, to), lambda b, o, k: (k, o)),   # var_w^T (bf16)
                pl.BlockSpec((1, to), lambda b, o, k: (0, o)),    # bias_mu
                pl.BlockSpec((1, to), lambda b, o, k: (0, o)),    # bias_sigma^2
                pl.BlockSpec((tb, to), lambda b, o, k: (b, o)),   # eps (bf16)
            ],
            out_specs=pl.BlockSpec((tb, to), lambda b, o, k: (b, o)),
            scratch_shapes=[pltpu.VMEM((tb, to), jnp.float32),    # e_b acc
                            pltpu.VMEM((tb, to), jnp.float32)],   # var_b acc
            compiler_params=pltpu.CompilerParams(
                dimension_semantics=("parallel", "parallel", "arbitrary"),
                vmem_limit_bytes=_VMEM_LIMIT,
            ),
        )(x_p, e_w_t, var_w_t, bmu_p, bsig2_p, eps_p)

    return out_p[:B, :O]


# --------------------------------------------------------------------------
# Pure-JAX reference (f32)
# --------------------------------------------------------------------------
def _reference_forward(x, weight_mu, weight_rho, lambdal, bias_mu, bias_rho, eps):
    alpha = 1.0 / (1.0 + jnp.exp(-lambdal))
    w_sigma = jnp.log1p(jnp.exp(weight_rho))
    b_sigma = jnp.log1p(jnp.exp(bias_rho))
    e_w = weight_mu * alpha
    var_w = alpha * (w_sigma ** 2 + (1.0 - alpha) * weight_mu ** 2)
    e_b = x @ e_w.T + bias_mu
    var_b = (x ** 2) @ var_w.T + b_sigma ** 2
    return e_b + jnp.sqrt(var_b) * eps


if __name__ == "__main__":
    lower_init_lambda, upper_init_lambda = -10.0, -7.0

    def run_case(batch, in_features, out_features, key, atol, rtol):
        k_x, k_wmu, k_wrho, k_lam, k_bmu, k_brho, k_eps = jax.random.split(key, 7)
        weight_mu = jax.random.uniform(k_wmu, (out_features, in_features),
                                       minval=-1.2, maxval=1.2, dtype=jnp.float32)
        weight_rho = -9.0 + 0.1 * jax.random.normal(
            k_wrho, (out_features, in_features), dtype=jnp.float32)
        lambdal = jax.random.uniform(k_lam, (out_features, in_features),
                                     minval=lower_init_lambda,
                                     maxval=upper_init_lambda, dtype=jnp.float32)
        bias_mu = jax.random.uniform(k_bmu, (out_features,),
                                     minval=-0.2, maxval=0.2, dtype=jnp.float32)
        bias_rho = -9.0 + 0.1 * jax.random.normal(k_brho, (out_features,),
                                                  dtype=jnp.float32)
        x = jax.random.normal(k_x, (batch, in_features), dtype=jnp.float32)
        eps = jax.random.normal(k_eps, (batch, out_features), dtype=jnp.float32)

        out = jax.block_until_ready(
            bayesian_linear_forward(x, weight_mu, weight_rho, lambdal,
                                    bias_mu, bias_rho, eps))
        ref = _reference_forward(x, weight_mu, weight_rho, lambdal,
                                 bias_mu, bias_rho, eps)
        assert out.shape == (batch, out_features)
        # bf16 MXU inputs (f32 accumulation) => loose tolerance vs f32 reference.
        assert jnp.allclose(out, ref, atol=atol, rtol=rtol), (
            f"mismatch vs reference (B={batch}, I={in_features}, O={out_features})")

    key = jax.random.PRNGKey(0)
    k1, k2 = jax.random.split(key)
    # Small layer: single batch tile -> fused one-pass kernel path.
    run_case(8, 32, 16, k1, atol=1e-2, rtol=1e-2)
    # Larger layer with multiple batch tiles -> two-pass (transform + matmul) path.
    run_case(640, 256, 320, k2, atol=2e-2, rtol=2e-2)

    print("KERNEL_OK")
</pallas_src>

<mosaic_0001>
module attributes {stable_mosaic.version = 11 : i64} {
  func.func @_bayes_fused_kernel(%arg0: i32, %arg1: i32, %arg2: memref<8x128xbf16, #tpu.memory_space<vmem>>, %arg3: memref<128x128xf32, #tpu.memory_space<vmem>>, %arg4: memref<128x128xf32, #tpu.memory_space<vmem>>, %arg5: memref<128x128xf32, #tpu.memory_space<vmem>>, %arg6: memref<1x128xf32, #tpu.memory_space<vmem>>, %arg7: memref<1x128xf32, #tpu.memory_space<vmem>>, %arg8: memref<8x128xbf16, #tpu.memory_space<vmem>>, %arg9: memref<8x128xf32, #tpu.memory_space<vmem>>, %arg10: memref<8x128xf32, #tpu.memory_space<vmem>>, %arg11: memref<8x128xf32, #tpu.memory_space<vmem>>) attributes {dimension_semantics = [#tpu.dimension_semantics<parallel>, #tpu.dimension_semantics<arbitrary>], iteration_bounds = array<i64: 1, 1>, scalar_prefetch = 0 : i64, scratch_operands = 2 : i64, tpu.core_type = #tpu.core_type<tc>, window_params = [{transform_indices = @transform_0, window_bounds = array<i64: 8, 128>}, {transform_indices = @transform_1, window_bounds = array<i64: 128, 128>}, {transform_indices = @transform_2, window_bounds = array<i64: 128, 128>}, {transform_indices = @transform_3, window_bounds = array<i64: 128, 128>}, {transform_indices = @transform_4, window_bounds = array<i64: 1, 128>}, {transform_indices = @transform_5, window_bounds = array<i64: 1, 128>}, {transform_indices = @transform_6, window_bounds = array<i64: 8, 128>}, {transform_indices = @transform_7, window_bounds = array<i64: 8, 128>}]} {
    %c0_i32 = arith.constant 0 : i32
    %0 = arith.cmpi eq, %arg1, %c0_i32 : i32
    %1 = arith.extui %0 : i1 to i32
    %c0_i32_0 = arith.constant 0 : i32
    %2 = arith.cmpi ne, %1, %c0_i32_0 : i32
    scf.if %2 {
      %cst_25 = arith.constant 0.000000e+00 : f32
      %48 = vector.broadcast %cst_25 : f32 to vector<8x128xf32>
      %c0_26 = arith.constant 0 : index
      %c0_27 = arith.constant 0 : index
      %49 = vector.load %arg10[%c0_26, %c0_27] : memref<8x128xf32, #tpu.memory_space<vmem>>, vector<8x128xf32>
      tpu.vector_store %arg10[%c0_26, %c0_27], %48 {strides = array<i32>} : memref<8x128xf32, #tpu.memory_space<vmem>>, vector<8x128xf32>,
      %cst_28 = arith.constant 0.000000e+00 : f32
      %50 = vector.broadcast %cst_28 : f32 to vector<8x128xf32>
      %c0_29 = arith.constant 0 : index
      %c0_30 = arith.constant 0 : index
      %51 = vector.load %arg11[%c0_29, %c0_30] : memref<8x128xf32, #tpu.memory_space<vmem>>, vector<8x128xf32>
      tpu.vector_store %arg11[%c0_29, %c0_30], %50 {strides = array<i32>} : memref<8x128xf32, #tpu.memory_space<vmem>>, vector<8x128xf32>,
    } else {
    }
    %c0 = arith.constant 0 : index
    %c0_1 = arith.constant 0 : index
    %3 = vector.load %arg3[%c0, %c0_1] : memref<128x128xf32, #tpu.memory_space<vmem>>, vector<128x128xf32>
    %c0_2 = arith.constant 0 : index
    %c0_3 = arith.constant 0 : index
    %4 = vector.load %arg4[%c0_2, %c0_3] : memref<128x128xf32, #tpu.memory_space<vmem>>, vector<128x128xf32>
    %c0_4 = arith.constant 0 : index
    %c0_5 = arith.constant 0 : index
    %5 = vector.load %arg5[%c0_4, %c0_5] : memref<128x128xf32, #tpu.memory_space<vmem>>, vector<128x128xf32>
    %cst = arith.constant 5.000000e-01 : f32
    %6 = vector.broadcast %cst : f32 to vector<128x128xf32>
    %7 = arith.mulf %6, %5 : vector<128x128xf32>
    %8 = math.tanh %7 : vector<128x128xf32>
    %cst_6 = arith.constant 1.000000e+00 : f32
    %9 = vector.broadcast %cst_6 : f32 to vector<128x128xf32>
    %10 = arith.addf %8, %9 : vector<128x128xf32>
    %cst_7 = arith.constant 5.000000e-01 : f32
    %11 = vector.broadcast %cst_7 : f32 to vector<128x128xf32>
    %12 = arith.mulf %11, %10 : vector<128x128xf32>
    %cst_8 = arith.constant 0.000000e+00 : f32
    %13 = vector.broadcast %cst_8 : f32 to vector<128x128xf32>
    %14 = arith.maximumf %4, %13 : vector<128x128xf32>
    %15 = math.absf %4 : vector<128x128xf32>
    %cst_9 = arith.constant 0.000000e+00 : f32
    %16 = vector.broadcast %cst_9 : f32 to vector<128x128xf32>
    %17 = arith.subf %16, %15 : vector<128x128xf32>
    %18 = math.exp %17 : vector<128x128xf32>
    %19 = math.log1p %18 : vector<128x128xf32>
    %20 = arith.addf %14, %19 : vector<128x128xf32>
    %21 = arith.mulf %3, %12 : vector<128x128xf32>
    %22 = arith.mulf %20, %20 : vector<128x128xf32>
    %cst_10 = arith.constant 1.000000e+00 : f32
    %23 = vector.broadcast %cst_10 : f32 to vector<128x128xf32>
    %24 = arith.subf %23, %12 : vector<128x128xf32>
    %25 = arith.mulf %24, %3 : vector<128x128xf32>
    %26 = arith.mulf %25, %3 : vector<128x128xf32>
    %27 = arith.addf %22, %26 : vector<128x128xf32>
    %28 = arith.mulf %12, %27 : vector<128x128xf32>
    %29 = tpu.transpose %21, [1, 0] : vector<128x128xf32> -> vector<128x128xf32>
    %30 = arith.truncf %29 : vector<128x128xf32> to vector<128x128xbf16>
    %31 = tpu.transpose %28, [1, 0] : vector<128x128xf32> -> vector<128x128xf32>
    %32 = arith.truncf %31 : vector<128x128xf32> to vector<128x128xbf16>
    %c0_11 = arith.constant 0 : index
    %c0_12 = arith.constant 0 : index
    %33 = vector.load %arg2[%c0_11, %c0_12] : memref<8x128xbf16, #tpu.memory_space<vmem>>, vector<8x128xbf16>
    %34 = arith.extf %33 : vector<8x128xbf16> to vector<8x128xf32>
    %35 = arith.mulf %34, %34 : vector<8x128xf32>
    %36 = arith.truncf %35 : vector<8x128xf32> to vector<8x128xbf16>
    %c0_13 = arith.constant 0 : index
    %c0_14 = arith.constant 0 : index
    %37 = vector.load %arg10[%c0_13, %c0_14] : memref<8x128xf32, #tpu.memory_space<vmem>>, vector<8x128xf32>
    %cst_15 = arith.constant dense<0.000000e+00> : vector<8x128xf32>
    %38 = tpu.matmul %33, %30, %cst_15 {dimension_numbers = #tpu.dot_dimension_numbers<[1], [0], [0], [1], [0, 0, 1, 1], [], []>} : vector<8x128xbf16>, vector<128x128xbf16>, vector<8x128xf32> -> vector<8x128xf32>
    %39 = arith.addf %37, %38 : vector<8x128xf32>
    %c0_16 = arith.constant 0 : index
    %c0_17 = arith.constant 0 : index
    %40 = vector.load %arg10[%c0_16, %c0_17] : memref<8x128xf32, #tpu.memory_space<vmem>>, vector<8x128xf32>
    tpu.vector_store %arg10[%c0_16, %c0_17], %39 {strides = array<i32>} : memref<8x128xf32, #tpu.memory_space<vmem>>, vector<8x128xf32>,
    %c0_18 = arith.constant 0 : index
    %c0_19 = arith.constant 0 : index
    %41 = vector.load %arg11[%c0_18, %c0_19] : memref<8x128xf32, #tpu.memory_space<vmem>>, vector<8x128xf32>
    %cst_20 = arith.constant dense<0.000000e+00> : vector<8x128xf32>
    %42 = tpu.matmul %36, %32, %cst_20 {dimension_numbers = #tpu.dot_dimension_numbers<[1], [0], [0], [1], [0, 0, 1, 1], [], []>} : vector<8x128xbf16>, vector<128x128xbf16>, vector<8x128xf32> -> vector<8x128xf32>
    %43 = arith.addf %41, %42 : vector<8x128xf32>
    %c0_21 = arith.constant 0 : index
    %c0_22 = arith.constant 0 : index
    %44 = vector.load %arg11[%c0_21, %c0_22] : memref<8x128xf32, #tpu.memory_space<vmem>>, vector<8x128xf32>
    tpu.vector_store %arg11[%c0_21, %c0_22], %43 {strides = array<i32>} : memref<8x128xf32, #tpu.memory_space<vmem>>, vector<8x128xf32>,
    %c0_i32_23 = arith.constant 0 : i32
    %45 = arith.cmpi eq, %arg1, %c0_i32_23 : i32
    %46 = arith.extui %45 : i1 to i32
    %c0_i32_24 = arith.constant 0 : i32
    %47 = arith.cmpi ne, %46, %c0_i32_24 : i32
    scf.if %47 {
      %c0_25 = arith.constant 0 : index
      %c0_26 = arith.constant 0 : index
      %48 = vector.load %arg10[%c0_25, %c0_26] : memref<8x128xf32, #tpu.memory_space<vmem>>, vector<8x128xf32>
      %c0_27 = arith.constant 0 : index
      %c0_28 = arith.constant 0 : index
      %49 = vector.load %arg6[%c0_27, %c0_28] : memref<1x128xf32, #tpu.memory_space<vmem>>, vector<1x128xf32>
      %50 = vector.broadcast %49 : vector<1x128xf32> to vector<8x128xf32>
      %51 = arith.addf %48, %50 : vector<8x128xf32>
      %c0_29 = arith.constant 0 : index
      %c0_30 = arith.constant 0 : index
      %52 = vector.load %arg11[%c0_29, %c0_30] : memref<8x128xf32, #tpu.memory_space<vmem>>, vector<8x128xf32>
      %c0_31 = arith.constant 0 : index
      %c0_32 = arith.constant 0 : index
      %53 = vector.load %arg7[%c0_31, %c0_32] : memref<1x128xf32, #tpu.memory_space<vmem>>, vector<1x128xf32>
      %54 = vector.broadcast %53 : vector<1x128xf32> to vector<8x128xf32>
      %55 = arith.addf %52, %54 : vector<8x128xf32>
      %cst_33 = arith.constant 0.000000e+00 : f32
      %56 = vector.broadcast %cst_33 : f32 to vector<8x128xf32>
      %57 = arith.maximumf %55, %56 : vector<8x128xf32>
      %58 = math.sqrt %57 : vector<8x128xf32>
      %c0_34 = arith.constant 0 : index
      %c0_35 = arith.constant 0 : index
      %59 = vector.load %arg8[%c0_34, %c0_35] : memref<8x128xbf16, #tpu.memory_space<vmem>>, vector<8x128xbf16>
      %60 = arith.extf %59 : vector<8x128xbf16> to vector<8x128xf32>
      %61 = arith.mulf %58, %60 : vector<8x128xf32>
      %62 = arith.addf %51, %61 : vector<8x128xf32>
      %c0_36 = arith.constant 0 : index
      %c0_37 = arith.constant 0 : index
      %63 = vector.load %arg9[%c0_36, %c0_37] : memref<8x128xf32, #tpu.memory_space<vmem>>, vector<8x128xf32>
      tpu.vector_store %arg9[%c0_36, %c0_37], %62 {strides = array<i32>} : memref<8x128xf32, #tpu.memory_space<vmem>>, vector<8x128xf32>,
    } else {
    }
    return
  }
  func.func @transform_0(%arg0: i32, %arg1: i32) -> (i32, i32) {
    %c0_i32 = arith.constant 0 : i32
    %c0_i32_0 = arith.constant 0 : i32
    return %c0_i32, %arg1 : i32, i32
  }
  func.func @transform_1(%arg0: i32, %arg1: i32) -> (i32, i32) {
    %c0_i32 = arith.constant 0 : i32
    return %arg0, %arg1 : i32, i32
  }
  func.func @transform_2(%arg0: i32, %arg1: i32) -> (i32, i32) {
    %c0_i32 = arith.constant 0 : i32
    return %arg0, %arg1 : i32, i32
  }
  func.func @transform_3(%arg0: i32, %arg1: i32) -> (i32, i32) {
    %c0_i32 = arith.constant 0 : i32
    return %arg0, %arg1 : i32, i32
  }
  func.func @transform_4(%arg0: i32, %arg1: i32) -> (i32, i32) {
    %c0_i32 = arith.constant 0 : i32
    %c0_i32_0 = arith.constant 0 : i32
    return %c0_i32, %arg0 : i32, i32
  }
  func.func @transform_5(%arg0: i32, %arg1: i32) -> (i32, i32) {
    %c0_i32 = arith.constant 0 : i32
    %c0_i32_0 = arith.constant 0 : i32
    return %c0_i32, %arg0 : i32, i32
  }
  func.func @transform_6(%arg0: i32, %arg1: i32) -> (i32, i32) {
    %c0_i32 = arith.constant 0 : i32
    %c0_i32_0 = arith.constant 0 : i32
    return %c0_i32, %arg0 : i32, i32
  }
  func.func @transform_7(%arg0: i32, %arg1: i32) -> (i32, i32) {
    %c0_i32 = arith.constant 0 : i32
    %c0_i32_0 = arith.constant 0 : i32
    return %c0_i32, %arg0 : i32, i32
  }
}

</mosaic_0001>

<bundles_post_ra>
// kernel: bayesian_linear_forward.1
= control target key start
LH: loop header
LB: loop body
LE: loop exit
PB: predicated region body
PF: predicated region fallthrough
CT: control target
= control target key end

     0   :  { %s1538_s0 = inlined_call_operand.vmem [shape: bf16[8,128], index: 0, kind: input, shape index: {}]   ;;  %s1539_s1 = inlined_call_operand.vmem [shape: f32[128,128], index: 1, kind: input, shape index: {}]   ;;  %s1540_s2 = inlined_call_operand.vmem [shape: f32[128,128], index: 2, kind: input, shape index: {}]   ;;  %s1541_s3 = inlined_call_operand.vmem [shape: f32[128,128], index: 3, kind: input, shape index: {}]   ;;  %s1542_s4 = inlined_call_operand.vmem [shape: f32[1,128], index: 4, kind: input, shape index: {}]   ;;  %s1543_s5 = inlined_call_operand.vmem [shape: f32[1,128], index: 5, kind: input, shape index: {}]   ;;  %s1544_s6 = inlined_call_operand.vmem [shape: bf16[8,128], index: 6, kind: input, shape index: {}]   ;;  %s1545_s7 = inlined_call_operand.hbm [shape: f32[8,128], index: 7, kind: output, shape index: {}]  }
   0x1   :  { %v1059_v0 = vld [vmem:[%s1540_s2] sm:$0xff]  ;;  %v1068_v4 = vld [vmem:[%s1540_s2 + $0x8] sm:$0xff]  ;;  %v1077_v7 = vld [vmem:[%s1540_s2 + $0x10] sm:$0xff] }
   0x2   :  { %v66_v1 = vld [vmem:[%s1541_s3] sm:$0xff]  ;;  %v162_v3 = vand.u32 2147483647, %v1059_v0  ;;  %v67_v5 = vld [vmem:[%s1541_s3 + $0x8] sm:$0xff]  ;;  %v163_v6 = vand.u32 2147483647, %v1068_v4 }
   0x3   :  { %v82_v2 = vmul.f32 0.5, %v66_v1  ;;  %v83_v9 = vmul.f32 0.5, %v67_v5  ;;  %v68_v10 = vld [vmem:[%s1541_s3 + $0x10] sm:$0xff]  ;;  %v1085_v11 = vld [vmem:[%s1540_s2 + $0x18] sm:$0xff]  ;;  %v164_v14 = vand.u32 2147483647, %v1077_v7 }
   0x4   :  { %v178_v8 = vsub.f32 0.0, %v162_v3  ;;  %v179_v12 = vsub.f32 0.0, %v163_v6  ;;  %v84_v13 = vmul.f32 0.5, %v68_v10  ;;  %v69_v15 = vld [vmem:[%s1541_s3 + $0x18] sm:$0xff]  ;;  %v165_v17 = vand.u32 2147483647, %v1085_v11 }
   0x5   :  { %891 = vtanh.f32 %v82_v2  ;;  %v180_v19 = vsub.f32 0.0, %v164_v14  ;;  %v1095_v20 = vld [vmem:[%s1540_s2 + $0x20] sm:$0xff]  ;;  %v85_v21 = vmul.f32 0.5, %v69_v15  ;;  %v1103_v24 = vld [vmem:[%s1540_s2 + $0x28] sm:$0xff]  ;;  %v1109_v27 = vld [vmem:[%s1540_s2 + $0x30] sm:$0xff]  ;;  %v146_v34 = vmax.f32 %v1059_v0, 0.0 }
   0x6   :  { %v194_v16 = vmul.f32 1.442695, %v178_v8  ;;  %893 = vtanh.f32 %v83_v9  ;;  %v196_v18 = vmul.f32 1.442695, %v179_v12  ;;  %v181_v22 = vsub.f32 0.0, %v165_v17  ;;  %v70_v23 = vld [vmem:[%s1541_s3 + $0x20] sm:$0xff] }
   0x7   :  { %895 = vtanh.f32 %v84_v13  ;;  %v198_v25 = vmul.f32 1.442695, %v180_v19  ;;  %v166_v26 = vand.u32 2147483647, %v1095_v20  ;;  %v71_v29 = vld [vmem:[%s1541_s3 + $0x28] sm:$0xff]  ;;  %v86_v31 = vmul.f32 0.5, %v70_v23 }
   0x8   :  { %897 = vpow2.f32 %v194_v16  ;;  %v200_v28 = vmul.f32 1.442695, %v181_v22  ;;  %v167_v30 = vand.u32 2147483647, %v1103_v24  ;;  %v1118_v33 = vld [vmem:[%s1540_s2 + $0x38] sm:$0xff]  ;;  %v72_v36 = vld [vmem:[%s1541_s3 + $0x30] sm:$0xff] }
   0x9   :  { %899 = vpow2.f32 %v196_v18  ;;  %v182_v32 = vsub.f32 0.0, %v166_v26  ;;  %v168_v37 = vand.u32 2147483647, %v1109_v27  ;;  %v147_v38 = vmax.f32 %v1068_v4, 0.0  ;;  %v73_v49 = vld [vmem:[%s1541_s3 + $0x38] sm:$0xff]  ;;  %v1135_v50 = vld [vmem:[%s1540_s2 + $0x40] sm:$0xff] }
   0xa   :  { %901 = vpow2.f32 %v198_v25  ;;  %v183_v35 = vsub.f32 0.0, %v167_v30  ;;  %v87_v40 = vmul.f32 0.5, %v71_v29  ;;  %v148_v42 = vmax.f32 %v1077_v7, 0.0  ;;  %v74_v62 = vld [vmem:[%s1541_s3 + $0x40] sm:$0xff]  ;;  %v75_v6 = vld [vmem:[%s1541_s3 + $0x48] sm:$0xff] }
   0xb   :  { %903 = vtanh.f32 %v85_v21  ;;  %v202_v39 = vmul.f32 1.442695, %v182_v32  ;;  %v184_v44 = vsub.f32 0.0, %v168_v37  ;;  %v169_v45 = vand.u32 2147483647, %v1118_v33  ;;  %v34_v8 = vld [vmem:[%s1539_s1] sm:$0xff] }
   0xc   :  { %905 = vpow2.f32 %v200_v28  ;;  %v204_v43 = vmul.f32 1.442695, %v183_v35  ;;  %v149_v47 = vmax.f32 %v1085_v11, 0.0  ;;  %v88_v48 = vmul.f32 0.5, %v72_v36  ;;  %v35_v30 = vld [vmem:[%s1539_s1 + $0x8] sm:$0xff] }
   0xd   :  { %907 = vtanh.f32 %v86_v31  ;;  %v150_v52 = vmax.f32 %v1095_v20, 0.0  ;;  %v206_v54 = vmul.f32 1.442695, %v184_v44  ;;  %v1142_v60 = vmul.f32 0.5, %v73_v49 }
   0xe   :  { %909 = vpow2.f32 %v202_v39  ;;  %v185_v61 = vsub.f32 0.0, %v169_v45  ;;  %v170_v63 = vand.u32 2147483647, %v1135_v50  ;;  %v1157_v16 = vmul.f32 0.5, %v74_v62 }
   0xf   :  { %v892_v41 = vpop.eup %891  ;;  %911 = vtanh.f32 %v87_v40  ;;  %v1161_v21 = vmul.f32 0.5, %v75_v6 }
  0x10   :  { %v114_v46 = vadd.f32 1.0, %v892_v41  ;;  %v894_v51 = vpop.eup %893  ;;  %913 = vpow2.f32 %v204_v43  ;;  %v1159_v19 = vmul.f32 1.442695, %v185_v61  ;;  %v1174_v35 = vsub.f32 0.0, %v170_v63 }
  0x11   :  { %v896_v55 = vpop.eup %895  ;;  %v115_v57 = vadd.f32 1.0, %v894_v51  ;;  %915 = vtanh.f32 %v88_v48 }
  0x12   :  { %v1139_v56 = vmul.f32 0.5, %v114_v46  ;;  %v898_v59 = vpop.eup %897  ;;  %v116_v5 = vadd.f32 1.0, %v896_v55  ;;  %917 = vpow2.f32 %v206_v54 }
  0x13   :  { %v900_v1 = vpop.eup %899  ;;  %v226_v2 = vadd.f32 1.0, %v898_v59  ;;  %v229_v3 = vmul.f32 -0.5, %v898_v59  ;;  %v1155_v10 = vmul.f32 0.5, %v115_v57  ;;  %v232_v14 = vand.u32 2147483647, %v898_v59 }
  0x14   :  { %v418_v9 = vsub.f32 1.0, %v1139_v56  ;;  %v235_v12 = vadd.f32 1.0, %v900_v1  ;;  %v902_v13 = vpop.eup %901  ;;  %v238_v15 = vmul.f32 -0.5, %v900_v1  ;;  %v241_v25 = vand.u32 2147483647, %v900_v1 }
  0x15   :  { %919 = vlog2.f32 %v226_v2  ;;  %v904_v17 = vpop.eup %903  ;;  %v230_v18 = vadd.f32 1.0, %v229_v3  ;;  %v419_v26 = vsub.f32 1.0, %v1155_v10  ;;  %v1166_v28 = vmul.f32 0.5, %v116_v5 }
  0x16   :  { %921 = vlog2.f32 %v235_v12  ;;  %v1163_v22 = vpop.eup %905  ;;  %v434_v23 = vmul.f32 %v418_v9, %v34_v8  ;;  %v1169_v29 = vmul.f32 %v1139_v56, %v34_v8  ;;  %v244_v31 = vadd.f32 1.0, %v902_v13 }
  0x17   :  { %v247_v32 = vmul.f32 -0.5, %v902_v13 }
  0x18   :  { %12 = vsyncpa [#allocation5], 0  ;;  %v908_v36 = vpop.eup %907  ;;  %vm1176_vm0 = vcmp.lt.f32.partialorder %v232_v14, 0.0004427343  ;;  %v239_v39 = vadd.f32 1.0, %v238_v15  ;;  %v1181_v40 = vmul.f32 %v1155_v10, %v35_v30  ;;  %v420_v41 = vsub.f32 1.0, %v1166_v28 }
  0x19   :  { %v910_v43 = vpop.eup %909  ;;  %v231_v44 = vmul.f32 %v898_v59, %v230_v18  ;;  %v36_v45 = vld [vmem:[%s1539_s1 + $0x10] sm:$0xff]  ;;  %923 = vlog2.f32 %v244_v31  ;;  %v117_v46 = vadd.f32 1.0, %v904_v17  ;;  %v253_v48 = vadd.f32 1.0, %v1163_v22 }
  0x1a   :  { %v912_v49 = vpop.eup %911  ;;  %v450_v51 = vmul.f32 %v434_v23, %v34_v8  ;;  %vm1188_vm1 = vcmp.lt.f32.partialorder %v241_v25, 0.0004427343  ;;  %v435_v55 = vmul.f32 %v419_v26, %v35_v30  ;;  %v250_v57 = vand.u32 2147483647, %v902_v13  ;;  %v37_v26 = vld [vmem:[%s1539_s1 + $0x18] sm:$0xff] }
  0x1b   :  { %v1192_v61 = vpop.eup %913  ;;  %v248_v62 = vadd.f32 1.0, %v247_v32  ;;  %v1194_v59 = vmul.f32 0.5, %v117_v46  ;;  %925 = vlog2.f32 %v253_v48  ;;  %v256_v63 = vmul.f32 -0.5, %v1163_v22 }
  0x1c   :  { %v916_v2 = vpop.eup %915  ;;  %v436_v3 = vmul.f32 %v420_v41, %v36_v45  ;;  %v259_v5 = vand.u32 2147483647, %v1163_v22  ;;  %v118_v6 = vadd.f32 1.0, %v908_v36  ;;  %v262_v8 = vadd.f32 1.0, %v910_v43 }
  0x1d   :  { %v1198_v9 = vpop.eup %917  ;;  %v240_v12 = vmul.f32 %v900_v1, %v239_v39  ;;  %v1201_v14 = vmul.f32 %v1166_v28, %v36_v45  ;;  %v421_v15 = vsub.f32 1.0, %v1194_v59  ;;  %v265_v17 = vmul.f32 -0.5, %v910_v43 }
  0x1e   :  { %v451_v23 = vmul.f32 %v435_v55, %v35_v30  ;;  %vm1204_vm2 = vcmp.lt.f32.partialorder %v250_v57, 0.0004427343  ;;  %v1211_v31 = vmul.f32 0.5, %v118_v6  ;;  %927 = vlog2.f32 %v262_v8 }
  0x1f   :  { %v920_v18 = vpop.eup %919  ;;  %v249_v36 = vmul.f32 %v902_v13, %v248_v62  ;;  %v257_v39 = vadd.f32 1.0, %v256_v63  ;;  %v268_v41 = vand.u32 2147483647, %v910_v43  ;;  %v452_v48 = vmul.f32 %v436_v3, %v36_v45 }
  0x20   :  { %v922_v1 = vpop.eup %921  ;;  %v228_v32 = vmul.f32 0.6931472, %v920_v18  ;;  %vm1213_vm3 = vcmp.lt.f32.partialorder %v259_v5, 0.0004427343  ;;  %v119_v55 = vadd.f32 1.0, %v912_v49  ;;  %v437_v58 = vmul.f32 %v421_v15, %v37_v26  ;;  %v1230_v49 = vld [vmem:[%s1539_s1 + $0x20] sm:$0xff] }
  0x21   :  { %v237_v46 = vmul.f32 0.6931472, %v922_v1  ;;  %v266_v53 = vadd.f32 1.0, %v265_v17  ;;  %v422_v6 = vsub.f32 1.0, %v1211_v31  ;;  %v1225_v45 = vmul.f32 %v1194_v59, %v37_v26 }
  0x22   :  { %v234_v57 = vsel %vm1176_vm0, %v231_v44, %v228_v32  ;;  %v271_v37 = vadd.f32 1.0, %v1192_v61  ;;  %v258_v0 = vmul.f32 %v1163_v22, %v257_v39  ;;  %vm1236_vm4 = vcmp.lt.f32.partialorder %v268_v41, 0.0004427343 }
  0x23   :  { %v370_v8 = vadd.f32 %v234_v57, %v146_v34  ;;  %v243_v13 = vsel %vm1188_vm1, %v240_v12, %v237_v46  ;;  %v924_v44 = vpop.eup %923  ;;  %v274_v54 = vmul.f32 -0.5, %v1192_v61  ;;  %v1241_v5 = vmul.f32 0.5, %v119_v55 }
  0x24   :  { %v371_v62 = vadd.f32 %v243_v13, %v147_v38  ;;  %v246_v3 = vmul.f32 0.6931472, %v924_v44  ;;  %929 = vlog2.f32 %v271_v37  ;;  %v453_v17 = vmul.f32 %v437_v58, %v37_v26 }
  0x25   :  { %v402_v63 = vmul.f32 %v370_v8, %v370_v8  ;;  %v926_v12 = vpop.eup %925  ;;  %v267_v18 = vmul.f32 %v910_v43, %v266_v53  ;;  %v438_v4 = vmul.f32 %v422_v6, %v1230_v49  ;;  %v277_v32 = vand.u32 2147483647, %v1192_v61 }
  0x26   :  { %v403_v15 = vmul.f32 %v371_v62, %v371_v62  ;;  %v252_v22 = vsel %vm1204_vm2, %v249_v36, %v246_v3  ;;  %v255_v1 = vmul.f32 0.6931472, %v926_v12  ;;  %v275_v46 = vadd.f32 1.0, %v274_v54  ;;  %v1280_v62 = vld [vmem:[%s1540_s2 + $0x48] sm:$0xff] }
  0x27   :  { %v466_v38 = vadd.f32 %v450_v51, %v402_v63  ;;  %v372_v41 = vadd.f32 %v252_v22, %v148_v42  ;;  %v120_v55 = vadd.f32 1.0, %v916_v2  ;;  %v423_v58 = vsub.f32 1.0, %v1241_v5 }
  0x28   :  { %v467_v39 = vadd.f32 %v451_v23, %v403_v15  ;;  %v928_v57 = vpop.eup %927  ;;  %v261_v53 = vsel %vm1213_vm3, %v258_v0, %v255_v1  ;;  %v280_v43 = vadd.f32 1.0, %v1198_v9  ;;  %v454_v2 = vmul.f32 %v438_v4, %v1230_v49 }
  0x29   :  { %v482_v8 = vmul.f32 %v466_v38, %v1139_v56  ;;  %v404_v25 = vmul.f32 %v372_v41, %v372_v41  ;;  %v373_v23 = vadd.f32 %v261_v53, %v149_v47  ;;  %v264_v7 = vmul.f32 0.6931472, %v928_v57  ;;  %v39_v56 = vld [vmem:[%s1539_s1 + $0x28] sm:$0xff] }
  0x2a   :  { %v483_v51 = vmul.f32 %v467_v39, %v1155_v10  ;;  %931 = vlog2.f32 %v280_v43  ;;  %v283_v26 = vmul.f32 -0.5, %v1198_v9  ;;  %v1265_v6 = vmul.f32 0.5, %v120_v55 }
  0x2b   :  { %v779_v42 = vpack.i.bf16 %v1169_v29, %v482_v8  ;;  %v468_v36 = vadd.f32 %v452_v48, %v404_v25  ;;  %v405_v30 = vmul.f32 %v373_v23, %v373_v23  ;;  %v270_v10 = vsel %vm1236_vm4, %v267_v18, %v264_v7 }
  0x2c   :  { %v781_v11 = vpack.i.bf16 %v1181_v40, %v483_v51  ;;  %v374_v47 = vadd.f32 %v270_v10, %v150_v52  ;;  %v276_v29 = vmul.f32 %v1192_v61, %v275_v46  ;;  %vm1271_vm5 = vcmp.lt.f32.partialorder %v277_v32, 0.0004427343 }
  0x2d   :  { %780 = vxpose.xlu0.b32.start [1/16] %v779_v42, 128  ;;  %v484_v48 = vmul.f32 %v468_v36, %v1166_v28  ;;  %v469_v37 = vadd.f32 %v453_v17, %v405_v30  ;;  %v439_v44 = vmul.f32 %v423_v58, %v39_v56  ;;  %933 = vtanh.f32 %v1142_v60  ;;  %v40_v60 = vld [vmem:[%s1539_s1 + $0x30] sm:$0xff]  ;;  %v77_v36 = vld [vmem:[%s1541_s3 + $0x58] sm:$0xff] }
  0x2e   :  { %v930_v40 = vpop.eup %929  ;;  %v406_v20 = vmul.f32 %v374_v47, %v374_v47  ;;  %v284_v52 = vadd.f32 1.0, %v283_v26  ;;  %v286_v61 = vand.u32 2147483647, %v1198_v9  ;;  %935 = vpow2.f32 %v1159_v19  ;;  %v1296_v19 = vld [vmem:[%s1540_s2 + $0x50] sm:$0xff] }
  0x2f   :  { %v783_v0 = vpack.i.bf16 %v1201_v14, %v484_v48  ;;  %v485_v28 = vmul.f32 %v469_v37, %v1194_v59  ;;  %v273_v34 = vmul.f32 0.6931472, %v930_v40  ;;  %v424_v54 = vsub.f32 1.0, %v1265_v6  ;;  %v76_v59 = vld [vmem:[%s1541_s3 + $0x50] sm:$0xff] }
  0x30   :  { %v470_v63 = vadd.f32 %v454_v2, %v406_v20  ;;  %937 = vtanh.f32 %v1157_v16  ;;  %v210_v3 = vmul.f32 1.442695, %v1174_v35  ;;  %v171_v12 = vand.u32 2147483647, %v1280_v62 }
  0x31   :  { %782 = vxpose.xlu0.b32.cont [2/16] %v781_v11, 128  ;;  %v390_v14 = vmul.f32 %v1211_v31, %v1230_v49  ;;  %v279_v15 = vsel %vm1271_vm5, %v276_v29, %v273_v34  ;;  %v455_v16 = vmul.f32 %v439_v44, %v39_v56  ;;  %939 = vtanh.f32 %v1161_v21 }
  0x32   :  { %v1558_v35 = vmax.f32 %v1103_v24, 0.0  ;;  %v285_v18 = vmul.f32 %v1198_v9, %v284_v52  ;;  %941 = vpow2.f32 %v210_v3  ;;  %v187_v4 = vsub.f32 0.0, %v171_v12 }
  0x33   :  { %vm1309_vm6 = vcmp.lt.f32.partialorder %v286_v61, 0.0004427343  ;;  %v440_v22 = vmul.f32 %v424_v54, %v40_v60  ;;  %v92_v1 = vmul.f32 0.5, %v76_v59  ;;  %v172_v49 = vand.u32 2147483647, %v1296_v19  ;;  %v41_v59 = vld [vmem:[%s1539_s1 + $0x38] sm:$0xff] }
  0x34   :  { %v375_v17 = vadd.f32 %v279_v15, %v1558_v35  ;;  %v932_v32 = vpop.eup %931  ;;  %v785_v39 = vpack.i.bf16 %v1225_v45, %v485_v28  ;;  %v486_v21 = vmul.f32 %v470_v63, %v1211_v31  ;;  %v212_v41 = vmul.f32 1.442695, %v187_v4  ;;  %v1322_v45 = vld [vmem:[%s1540_s2 + $0x58] sm:$0xff] }
  0x35   :  { %784 = vxpose.xlu0.b32.cont [3/16] %v783_v0, 128  ;;  %v282_v46 = vmul.f32 0.6931472, %v932_v32  ;;  %943 = vtanh.f32 %v92_v1  ;;  %v188_v9 = vsub.f32 0.0, %v172_v49  ;;  %v391_v8 = vmul.f32 %v1241_v5, %v39_v56  ;;  %v42_v49 = vld [vmem:[%s1539_s1 + $0x40] sm:$0xff] }
  0x36   :  { %v407_v24 = vmul.f32 %v375_v17, %v375_v17  ;;  %945 = vpow2.f32 %v212_v41  ;;  %v456_v58 = vmul.f32 %v440_v22, %v40_v60  ;;  %v787_v51 = vpack.i.bf16 %v390_v14, %v486_v21 }
  0x37   :  { %v934_v57 = vpop.eup %933  ;;  %v288_v53 = vsel %vm1309_vm6, %v285_v18, %v282_v46  ;;  %v214_v43 = vmul.f32 1.442695, %v188_v9  ;;  %v1561_v23 = vmax.f32 %v1109_v27, 0.0  ;;  %v173_v30 = vand.u32 2147483647, %v1322_v45  ;;  %v78_v27 = vld [vmem:[%s1541_s3 + $0x60] sm:$0xff] }
  0x38   :  { %v471_v55 = vadd.f32 %v455_v16, %v407_v24  ;;  %v936_v31 = vpop.eup %935  ;;  %v121_v42 = vadd.f32 1.0, %v934_v57  ;;  %v392_v48 = vmul.f32 %v1265_v6, %v40_v60  ;;  %v93_v20 = vmul.f32 0.5, %v77_v36  ;;  %v79_v36 = vld [vmem:[%s1541_s3 + $0x68] sm:$0xff] }
  0x39   :  { %786 = vxpose.xlu0.b32.cont [4/16] %v785_v39, 128  ;;  %v376_v7 = vadd.f32 %v288_v53, %v1561_v23  ;;  %v289_v2 = vadd.f32 1.0, %v936_v31  ;;  %947 = vpow2.f32 %v214_v43  ;;  %v292_v47 = vmul.f32 -0.5, %v936_v31  ;;  %v43_v53 = vld [vmem:[%s1539_s1 + $0x48] sm:$0xff] }
  0x3a   :  { %v487_v25 = vmul.f32 %v471_v55, %v1241_v5  ;;  %v938_v56 = vpop.eup %937  ;;  %v1331_v11 = vmul.f32 0.5, %v121_v42  ;;  %v189_v0 = vsub.f32 0.0, %v173_v30  ;;  %v94_v28 = vmul.f32 0.5, %v78_v27 }
  0x3b   :  { %v408_v26 = vmul.f32 %v376_v7, %v376_v7  ;;  %v940_v10 = vpop.eup %939  ;;  %949 = vlog2.f32 %v289_v2  ;;  %v122_v5 = vadd.f32 1.0, %v938_v56  ;;  %v153_v54 = vmax.f32 %v1118_v33, 0.0 }
  0x3c   :  { %v1336_v29 = vpop.eup %941  ;;  %v789_v13 = vpack.i.bf16 %v391_v8, %v487_v25  ;;  %v123_v44 = vadd.f32 1.0, %v940_v10  ;;  %v293_v63 = vadd.f32 1.0, %v292_v47  ;;  %v425_v3 = vsub.f32 1.0, %v1331_v11 }
  0x3d   :  { %788 = vxpose.xlu0.b32.cont [5/16] %v787_v51, 128  ;;  %v472_v37 = vadd.f32 %v456_v58, %v408_v26  ;;  %v298_v40 = vadd.f32 1.0, %v1336_v29  ;;  %v1341_v61 = vmul.f32 0.5, %v122_v5  ;;  %v301_v14 = vmul.f32 -0.5, %v1336_v29  ;;  %v1380_v51 = vld [vmem:[%s1540_s2 + $0x60] sm:$0xff] }
  0x3e   :  { %v1352_v15 = vmul.f32 0.5, %v123_v44  ;;  %v295_v16 = vand.u32 2147483647, %v936_v31  ;;  %v155_v33 = vmax.f32 %v1280_v62, 0.0  ;;  %v156_v18 = vmax.f32 %v1296_v19, 0.0 }
  0x3f   :  { %v488_v52 = vmul.f32 %v472_v37, %v1265_v6  ;;  %v944_v34 = vpop.eup %943  ;;  %951 = vlog2.f32 %v298_v40  ;;  %v154_v6 = vmax.f32 %v1135_v50, 0.0  ;;  %v426_v17 = vsub.f32 1.0, %v1341_v61 }
  0x40   :  { %v1345_v12 = vpop.eup %945  ;;  %953 = vtanh.f32 %v93_v20  ;;  %v216_v4 = vmul.f32 1.442695, %v189_v0  ;;  %v294_v22 = vmul.f32 %v936_v31, %v293_v63  ;;  %v441_v1 = vmul.f32 %v425_v3, %v41_v59 }
  0x41   :  { %790 = vxpose.xlu0.b32.cont [6/16] %v789_v13, 128  ;;  %v791_v60 = vpack.i.bf16 %v392_v48, %v488_v52  ;;  %v307_v35 = vadd.f32 1.0, %v1345_v12  ;;  %955 = vtanh.f32 %v94_v28  ;;  %v124_v32 = vadd.f32 1.0, %v944_v34  ;;  %v1407_v28 = vld [vmem:[%s1540_s2 + $0x68] sm:$0xff]  ;;  %v80_v34 = vld [vmem:[%s1541_s3 + $0x70] sm:$0xff] }
  0x42   :  { %v302_v39 = vadd.f32 1.0, %v301_v14  ;;  %v310_v21 = vmul.f32 -0.5, %v1345_v12  ;;  %v427_v24 = vsub.f32 1.0, %v1352_v15  ;;  %vm1363_vm7 = vcmp.lt.f32.partialorder %v295_v16, 0.0004427343 }
  0x43   :  { %v948_v38 = vpop.eup %947  ;;  %957 = vlog2.f32 %v307_v35  ;;  %v1368_v55 = vmul.f32 %v1331_v11, %v41_v59  ;;  %v304_v57 = vand.u32 2147483647, %v1336_v29  ;;  %v1372_v8 = vmul.f32 %v1341_v61, %v42_v49 }
  0x44   :  { %v316_v41 = vadd.f32 1.0, %v948_v38  ;;  %v442_v43 = vmul.f32 %v426_v17, %v42_v49  ;;  %v319_v31 = vmul.f32 -0.5, %v948_v38  ;;  %v457_v25 = vmul.f32 %v441_v1, %v41_v59  ;;  %v44_v59 = vld [vmem:[%s1539_s1 + $0x50] sm:$0xff] }
  0x45   :  { %792 = vxpose.xlu0.b32.cont [7/16] %v791_v60, 128  ;;  %v950_v46 = vpop.eup %949  ;;  %v313_v23 = vand.u32 2147483647, %v1345_v12  ;;  %v1383_v7 = vmul.f32 0.5, %v124_v32  ;;  %v303_v2 = vmul.f32 %v1336_v29, %v302_v39  ;;  %v311_v56 = vadd.f32 1.0, %v310_v21 }
  0x46   :  { %v291_v58 = vmul.f32 0.6931472, %v950_v46  ;;  %959 = vlog2.f32 %v316_v41  ;;  %v443_v26 = vmul.f32 %v427_v24, %v43_v53  ;;  %vm1391_vm8 = vcmp.lt.f32.partialorder %v304_v57, 0.0004427343 }
  0x47   :  { %961 = vpow2.f32 %v216_v4  ;;  %v322_v5 = vand.u32 2147483647, %v948_v38  ;;  %v174_v27 = vand.u32 2147483647, %v1380_v51  ;;  %v458_v48 = vmul.f32 %v442_v43, %v42_v49 }
  0x48   :  { %v297_v42 = vsel %vm1363_vm7, %v294_v22, %v291_v58  ;;  %v1397_v37 = vmul.f32 %v1352_v15, %v43_v53  ;;  %v320_v29 = vadd.f32 1.0, %v319_v31  ;;  %vm1399_vm9 = vcmp.lt.f32.partialorder %v313_v23, 0.0004427343 }
  0x49   :  { %v952_v30 = vpop.eup %951  ;;  %v377_v10 = vadd.f32 %v297_v42, %v153_v54  ;;  %v428_v52 = vsub.f32 1.0, %v1383_v7  ;;  %v190_v0 = vsub.f32 0.0, %v174_v27  ;;  %v312_v3 = vmul.f32 %v1345_v12, %v311_v56  ;;  %v1427_v12 = vld [vmem:[%s1540_s2 + $0x70] sm:$0xff] }
  0x4a   :  { %v300_v13 = vmul.f32 0.6931472, %v952_v30  ;;  %v954_v44 = vpop.eup %953  ;;  %v459_v60 = vmul.f32 %v443_v26, %v43_v53  ;;  %v95_v14 = vmul.f32 0.5, %v79_v36  ;;  %vm1420_vm10 = vcmp.lt.f32.partialorder %v322_v5, 0.0004427343  ;;  %v1448_v36 = vld [vmem:[%s1540_s2 + $0x78] sm:$0xff] }
  0x4b   :  { %v409_v40 = vmul.f32 %v377_v10, %v377_v10  ;;  %v956_v54 = vpop.eup %955  ;;  %v218_v22 = vmul.f32 1.442695, %v190_v0  ;;  %v321_v49 = vmul.f32 %v948_v38, %v320_v29  ;;  %v175_v32 = vand.u32 2147483647, %v1407_v28 }
  0x4c   :  { %v306_v63 = vsel %vm1391_vm8, %v303_v2, %v300_v13  ;;  %v96_v39 = vmul.f32 0.5, %v80_v34  ;;  %v444_v50 = vmul.f32 %v428_v52, %v44_v59  ;;  %v176_v9 = vand.u32 2147483647, %v1427_v12 }
  0x4d   :  { %v958_v16 = vpop.eup %957  ;;  %v473_v35 = vadd.f32 %v457_v25, %v409_v40  ;;  %v378_v17 = vadd.f32 %v306_v63, %v154_v6  ;;  %963 = vpow2.f32 %v218_v22  ;;  %v191_v46 = vsub.f32 0.0, %v175_v32 }
  0x4e   :  { %v309_v1 = vmul.f32 0.6931472, %v958_v16  ;;  %965 = vtanh.f32 %v95_v14  ;;  %v192_v56 = vsub.f32 0.0, %v176_v9  ;;  %v396_v13 = vmul.f32 %v1383_v7, %v44_v59 }
  0x4f   :  { %v489_v21 = vmul.f32 %v473_v35, %v1331_v11  ;;  %v410_v24 = vmul.f32 %v378_v17, %v378_v17  ;;  %v125_v11 = vadd.f32 1.0, %v954_v44  ;;  %v220_v25 = vmul.f32 1.442695, %v191_v46 }
  0x50   :  { %v960_v6 = vpop.eup %959  ;;  %v315_v41 = vsel %vm1399_vm9, %v312_v3, %v309_v1  ;;  %967 = vtanh.f32 %v96_v39  ;;  %v222_v10 = vmul.f32 1.442695, %v192_v56  ;;  %v126_v29 = vadd.f32 1.0, %v956_v54  ;;  %v45_v54 = vld [vmem:[%s1539_s1 + $0x58] sm:$0xff] }
  0x51   :  { %v962_v57 = vpop.eup %961  ;;  %v793_v53 = vpack.i.bf16 %v1368_v55, %v489_v21  ;;  %v474_v38 = vadd.f32 %v458_v48, %v410_v24  ;;  %v379_v58 = vadd.f32 %v315_v41, %v155_v33  ;;  %v318_v43 = vmul.f32 0.6931472, %v960_v6  ;;  %v81_v55 = vld [vmem:[%s1541_s3 + $0x78] sm:$0xff] }
  0x52   :  { %v325_v31 = vadd.f32 1.0, %v962_v57  ;;  %v460_v33 = vmul.f32 %v444_v50, %v44_v59  ;;  %v328_v26 = vmul.f32 -0.5, %v962_v57  ;;  %v1451_v5 = vmul.f32 0.5, %v125_v11  ;;  %v46_v50 = vld [vmem:[%s1539_s1 + $0x60] sm:$0xff] }
  0x53   :  { %794 = vxpose.xlu0.b32.cont [8/16] %v793_v53, 128  ;;  %v490_v23 = vmul.f32 %v474_v38, %v1341_v61  ;;  %v411_v42 = vmul.f32 %v379_v58, %v379_v58  ;;  %v324_v2 = vsel %vm1420_vm10, %v321_v49, %v318_v43  ;;  %v97_v27 = vmul.f32 0.5, %v81_v55 }
  0x54   :  { %v380_v62 = vadd.f32 %v324_v2, %v156_v18  ;;  %969 = vlog2.f32 %v325_v31  ;;  %v177_v18 = vand.u32 2147483647, %v1448_v36  ;;  %v1013_v44 = vmov 0.0  }
  0x55   :  { %v795_v61 = vpack.i.bf16 %v1372_v8, %v490_v23  ;;  %v475_v30 = vadd.f32 %v459_v60, %v411_v42  ;;  %971 = vpow2.f32 %v220_v25  ;;  %736 = vmatprep.subr.bf16.mxu0 %v1013_v44  ;;  %756 = vmatprep.subr.bf16.mxu1 %v1013_v44  ;;  %v329_v20 = vadd.f32 1.0, %v328_v26 }
  0x56   :  { %v412_v47 = vmul.f32 %v380_v62, %v380_v62  ;;  %973 = vpow2.f32 %v222_v10  ;;  %v193_v52 = vsub.f32 0.0, %v177_v18  ;;  %v331_v34 = vand.u32 2147483647, %v962_v57  ;;  %v47_v62 = vld [vmem:[%s1539_s1 + $0x68] sm:$0xff] }
  0x57   :  { %796 = vxpose.xlu0.b32.cont [9/16] %v795_v61, 128  ;;  %v491_v19 = vmul.f32 %v475_v30, %v1352_v15  ;;  %v964_v8 = vpop.eup %963  ;;  %v429_v63 = vsub.f32 1.0, %v1451_v5  ;;  %975 = vtanh.f32 %v97_v27  ;;  %v1464_v16 = vmul.f32 0.5, %v126_v29 }
  0x58   :  { %v476_v48 = vadd.f32 %v460_v33, %v412_v47  ;;  %v966_v0 = vpop.eup %965  ;;  %v334_v3 = vadd.f32 1.0, %v964_v8  ;;  %v224_v60 = vmul.f32 1.442695, %v193_v52  ;;  %v337_v35 = vmul.f32 -0.5, %v964_v8  ;;  %v48_v52 = vld [vmem:[%s1539_s1 + $0x70] sm:$0xff] }
  0x59   :  { %v797_v40 = vpack.i.bf16 %v1397_v37, %v491_v19  ;;  %v330_v37 = vmul.f32 %v962_v57, %v329_v20  ;;  %v127_v17 = vadd.f32 1.0, %v966_v0  ;;  %v157_v4 = vmax.f32 %v1322_v45, 0.0 }
  0x5a   :  { %v492_v15 = vmul.f32 %v476_v48, %v1383_v7  ;;  %v968_v59 = vpop.eup %967  ;;  %977 = vlog2.f32 %v334_v3  ;;  %vm332_vm11 = vcmp.lt.f32.partialorder %v331_v34, 0.0004427343  ;;  %v445_v22 = vmul.f32 %v429_v63, %v45_v54 }
  0x5b   :  { %798 = vxpose.xlu0.b32.cont [10/16] %v797_v40, 128  ;;  %979 = vpow2.f32 %v224_v60  ;;  %v430_v32 = vsub.f32 1.0, %v1464_v16  ;;  %v338_v6 = vadd.f32 1.0, %v337_v35  ;;  %v1471_v41 = vmul.f32 0.5, %v127_v17 }
  0x5c   :  { %v799_v14 = vpack.i.bf16 %v396_v13, %v492_v15  ;;  %v128_v46 = vadd.f32 1.0, %v968_v59  ;;  %v461_v45 = vmul.f32 %v445_v22, %v45_v54  ;;  %v340_v57 = vand.u32 2147483647, %v964_v8 }
  0x5d   :  { %v158_v43 = vmax.f32 %v1380_v51, 0.0  ;;  %v446_v11 = vmul.f32 %v430_v32, %v46_v50  ;;  %v339_v25 = vmul.f32 %v964_v8, %v338_v6  ;;  %v431_v23 = vsub.f32 1.0, %v1471_v41 }
  0x5e   :  { %v970_v7 = vpop.eup %969  ;;  %v1475_v42 = vmul.f32 0.5, %v128_v46  ;;  %v397_v56 = vmul.f32 %v1451_v5, %v45_v54  ;;  %vm341_vm12 = vcmp.lt.f32.partialorder %v340_v57, 0.0004427343  ;;  %v159_v63 = vmax.f32 %v1407_v28, 0.0 }
  0x5f   :  { %v972_v1 = vpop.eup %971  ;;  %800 = vxpose.xlu0.b32.cont [11/16] %v799_v14, 128  ;;  %v327_v49 = vmul.f32 0.6931472, %v970_v7  ;;  %v462_v18 = vmul.f32 %v446_v11, %v46_v50  ;;  %v447_v13 = vmul.f32 %v431_v23, %v47_v62  ;;  %v398_v54 = vmul.f32 %v1464_v16, %v46_v50 }
  0x60   :  { %v343_v39 = vadd.f32 1.0, %v972_v1  ;;  %v974_v21 = vpop.eup %973  ;;  %v346_v53 = vmul.f32 -0.5, %v972_v1  ;;  %v349_v10 = vand.u32 2147483647, %v972_v1  ;;  %v432_v48 = vsub.f32 1.0, %v1475_v42 }
  0x61   :  { %v333_v24 = vsel %vm332_vm11, %v330_v37, %v327_v49  ;;  %v352_v38 = vadd.f32 1.0, %v974_v21  ;;  %v976_v31 = vpop.eup %975  ;;  %v355_v33 = vmul.f32 -0.5, %v974_v21  ;;  %v358_v0 = vand.u32 2147483647, %v974_v21 }
  0x62   :  { %v381_v9 = vadd.f32 %v333_v24, %v157_v4  ;;  %981 = vlog2.f32 %v343_v39  ;;  %v347_v61 = vadd.f32 1.0, %v346_v53  ;;  %v129_v47 = vadd.f32 1.0, %v976_v31  ;;  %v49_v24 = vld [vmem:[%s1539_s1 + $0x78] sm:$0xff] }
  0x63   :  { %983 = vlog2.f32 %v352_v38  ;;  %v356_v40 = vadd.f32 1.0, %v355_v33  ;;  %vm350_vm13 = vcmp.lt.f32.partialorder %v349_v10, 0.0004427343  ;;  %v160_v59 = vmax.f32 %v1427_v12, 0.0 }
  0x64   :  { %v413_v58 = vmul.f32 %v381_v9, %v381_v9  ;;  %v978_v2 = vpop.eup %977  ;;  %v348_v20 = vmul.f32 %v972_v1, %v347_v61  ;;  %v145_v3 = vmul.f32 0.5, %v129_v47  ;;  %v463_v37 = vmul.f32 %v447_v13, %v47_v62 }
  0x65   :  { %v980_v26 = vpop.eup %979  ;;  %v336_v51 = vmul.f32 0.6931472, %v978_v2  ;;  %v357_v35 = vmul.f32 %v974_v21, %v356_v40  ;;  %v448_v17 = vmul.f32 %v432_v48, %v48_v52  ;;  %vm359_vm14 = vcmp.lt.f32.partialorder %v358_v0, 0.0004427343 }
  0x66   :  { %v477_v55 = vadd.f32 %v461_v45, %v413_v58  ;;  %v361_v27 = vadd.f32 1.0, %v980_v26  ;;  %v364_v15 = vmul.f32 -0.5, %v980_v26  ;;  %v367_v1 = vand.u32 2147483647, %v980_v26 }
  0x67   :  { %v342_v19 = vsel %vm341_vm12, %v339_v25, %v336_v51  ;;  %v433_v39 = vsub.f32 1.0, %v145_v3  ;;  %v464_v21 = vmul.f32 %v448_v17, %v48_v52  ;;  %v161_v9 = vmax.f32 %v1448_v36, 0.0 }
  0x68   :  { %v493_v30 = vmul.f32 %v477_v55, %v1451_v5  ;;  %v382_v8 = vadd.f32 %v342_v19, %v158_v43  ;;  %985 = vlog2.f32 %v361_v27  ;;  %v365_v22 = vadd.f32 1.0, %v364_v15 }
  0x69   :  { %v399_v53 = vmul.f32 %v1471_v41, %v47_v62  ;;  %vm368_vm15 = vcmp.lt.f32.partialorder %v367_v1, 0.0004427343  ;;  %v449_v38 = vmul.f32 %v433_v39, %v49_v24  ;;  %v400_v31 = vmul.f32 %v1475_v42, %v48_v52 }
  0x6a   :  { %v801_v29 = vpack.i.bf16 %v397_v56, %v493_v30  ;;  %v414_v34 = vmul.f32 %v382_v8, %v382_v8  ;;  %v366_v45 = vmul.f32 %v980_v26, %v365_v22  ;;  %v401_v62 = vmul.f32 %v145_v3, %v49_v24 }
  0x6b   :  { %v465_v55 = vmul.f32 %v449_v38, %v49_v24  ;;  %vm1014_vm0 = vmmov 0  }
  0x6c   :  { %v982_v5 = vpop.eup %981  ;;  %802 = vxpose.xlu0.b32.cont [12/16] %v801_v29, 128  ;;  %v478_v14 = vadd.f32 %v462_v18, %v414_v34  ;;  %772 = vmatprep.mubr.msk.bf16.mxu1 %vm1014_vm0, %v1013_v44 }
  0x6d   :  { %v345_v60 = vmul.f32 0.6931472, %v982_v5  ;;  %v984_v7 = vpop.eup %983  ;;  %752 = vmatprep.mubr.msk.bf16.mxu0 %vm1014_vm0, %v1013_v44 }
  0x6e   :  { %v494_v49 = vmul.f32 %v478_v14, %v1464_v16  ;;  %v354_v28 = vmul.f32 0.6931472, %v984_v7 }
  0x6f   :  { %v351_v4 = vsel %vm350_vm13, %v348_v20, %v345_v60 }
  0x70   :  { %v383_v32 = vadd.f32 %v351_v4, %v159_v63  ;;  %v803_v50 = vpack.i.bf16 %v398_v54, %v494_v49  ;;  %v360_v6 = vsel %vm359_vm14, %v357_v35, %v354_v28 }
  0x71   :  { %v384_v46 = vadd.f32 %v360_v6, %v160_v59 }
  0x72   :  { %v415_v12 = vmul.f32 %v383_v32, %v383_v32  ;;  %v986_v57 = vpop.eup %985  ;;  %804 = vxpose.xlu0.b32.cont [13/16] %v803_v50, 128 }
  0x73   :  { %v416_v58 = vmul.f32 %v384_v46, %v384_v46  ;;  %v363_v43 = vmul.f32 0.6931472, %v986_v57 }
  0x74   :  { %v479_v16 = vadd.f32 %v463_v37, %v415_v12 }
  0x75   :  { %v480_v25 = vadd.f32 %v464_v21, %v416_v58  ;;  %v369_v23 = vsel %vm368_vm15, %v366_v45, %v363_v43 }
  0x76   :  { %v495_v11 = vmul.f32 %v479_v16, %v1471_v41  ;;  %v385_v56 = vadd.f32 %v369_v23, %v161_v9 }
  0x77   :  { %v496_v36 = vmul.f32 %v480_v25, %v1475_v42 }
  0x78   :  { %v805_v2 = vpack.i.bf16 %v399_v53, %v495_v11  ;;  %v417_v33 = vmul.f32 %v385_v56, %v385_v56  ;;  %v578_v56 = vld [vmem:[%s1538_s0] sm:$0xf] }
  0x79   :  { %v807_v26 = vpack.i.bf16 %v400_v31, %v496_v36 }
  0x7a   :  { %806 = vxpose.xlu0.b32.cont [14/16] %v805_v2, 128  ;;  %v481_v51 = vadd.f32 %v465_v55, %v417_v33 }
  0x7c   :  { %v497_v61 = vmul.f32 %v481_v51, %v145_v3 }
  0x7e   :  { %808 = vxpose.xlu0.b32.cont [15/16] %v807_v26, 128  ;;  %v809_v30 = vpack.i.bf16 %v401_v62, %v497_v61  ;;  %v579_v26 = vunpack.c.l.bf16 %v578_v56 }
  0x82   :  { %810 = vxpose.xlu0.b32.end [16/16] %v809_v30, 128  ;;  %v580_v30 = vmul.f32 %v579_v26, %v579_v26 }
  0xc6   :  { %v811_v41 = vpop.trf.xlu0 }
  0xc7   :  { %v815_v47 = vunpack.i.h.bf16 %v811_v41  ;;  %v812_v27 = vunpack.i.l.bf16 %v811_v41 }
  0xca   :  { %v816_v10 = vpop.trf.xlu0 }
  0xcb   :  { %v820_v19 = vunpack.i.h.bf16 %v816_v10  ;;  %v817_v42 = vunpack.i.l.bf16 %v816_v10 }
  0xcd   :  { %v530_v18 = vpack.c.bf16 %v820_v19, %v815_v47  ;;  %v570_v13 = vpack.c.bf16 %v817_v42, %v812_v27  ;;  %v581_v19 = vpack.c.bf16 %v580_v30, %v580_v30  ;;  %v717_v42 = vld [vmem:[%s1543_s5] ss:$0 sm:$0xff]  ;;  %s1015_s5 = smov [#allocation4]  }
  0xce   :  { %v821_v48 = vpop.trf.xlu0  ;;  %s708_s9 = sshll.u32 %s1015_s5, 4  ;;  %s709_s9 = int_to_ptr.vmem [resolvable:$true] %s708_s9 }
  0xcf   :  { %737 = vmatpush3.bf16.msra.mxu0 %v530_v18  ;;  %757 = vmatpush3.bf16.msra.mxu1 %v570_v13  ;;  %v825_v29 = vunpack.i.h.bf16 %v821_v48  ;;  %v822_v8 = vunpack.i.l.bf16 %v821_v48  ;;  %p994_p1 = scmp.lt.s32.totalorder %s709_s9, %s709_s9 }
  0xd0   :  { %738 = vmatprep.subr.bf16.mxu0 %v1013_v44  ;;  %758 = vmatprep.subr.bf16.mxu1 %v1013_v44 }
  0xd2   :  { %v826_v40 = vpop.trf.xlu0 }
  0xd3   :  { %v830_v20 = vunpack.i.h.bf16 %v826_v40  ;;  %v827_v52 = vunpack.i.l.bf16 %v826_v40 }
  0xd5   :  { %v531_v0 = vpack.c.bf16 %v830_v20, %v825_v29  ;;  %v571_v15 = vpack.c.bf16 %v827_v52, %v822_v8 }
  0xd6   :  { %v831_v5 = vpop.trf.xlu0 }
  0xd7   :  { %739 = vmatpush3.bf16.msra.mxu0 %v531_v0  ;;  %759 = vmatpush3.bf16.msra.mxu1 %v571_v15  ;;  %v835_v34 = vunpack.i.h.bf16 %v831_v5  ;;  %v832_v63 = vunpack.i.l.bf16 %v831_v5  ;;  %v697_v15 = vld [vmem:[%s1544_s6] sm:$0xf]  ;;  %s989_s6 = scalar_lea.vmem %s709_s9, 128 }
  0xd8   :  { %740 = vmatprep.subr.bf16.mxu0 %v1013_v44  ;;  %760 = vmatprep.subr.bf16.mxu1 %v1013_v44  ;;  %p990_p0 = scmp.ne.s32.totalorder %s709_s9, %s989_s6  ;;  %p995_p2 = scmp.lt.s32.totalorder %s989_s6, %s989_s6 }
  0xda   :  { %v836_v3 = vpop.trf.xlu0  ;;  %p996_p3 = por %p995_p2, %p994_p1 }
  0xdb   :  { %v840_v54 = vunpack.i.h.bf16 %v836_v3  ;;  %v837_v60 = vunpack.i.l.bf16 %v836_v3  ;;  %v698_v3 = vunpack.c.l.bf16 %v697_v15 }
  0xdc   :  { %p997_p4 = pnand %p996_p3, %p990_p0 }
  0xdd   :  { %v532_v59 = vpack.c.bf16 %v840_v54, %v835_v34  ;;  %v572_v14 = vpack.c.bf16 %v837_v60, %v832_v63  ;;  %v716_v34 = vld [vmem:[%s1542_s4] ss:$0 sm:$0xff] }
  0xde   :  { %v841_v37 = vpop.trf.xlu0 }
  0xdf   :  { %741 = vmatpush3.bf16.msra.mxu0 %v532_v59  ;;  %761 = vmatpush3.bf16.msra.mxu1 %v572_v14  ;;  %v845_v35 = vunpack.i.h.bf16 %v841_v37  ;;  %v842_v17 = vunpack.i.l.bf16 %v841_v37 }
  0xe0   :  { %742 = vmatprep.subr.bf16.mxu0 %v1013_v44  ;;  %762 = vmatprep.subr.bf16.mxu1 %v1013_v44 }
  0xe2   :  { %v846_v7 = vpop.trf.xlu0 }
  0xe3   :  { %v850_v4 = vunpack.i.h.bf16 %v846_v7  ;;  %v847_v22 = vunpack.i.l.bf16 %v846_v7 }
  0xe5   :  { %v533_v1 = vpack.c.bf16 %v850_v4, %v845_v35  ;;  %v573_v49 = vpack.c.bf16 %v847_v22, %v842_v17 }
  0xe6   :  { %v851_v32 = vpop.trf.xlu0 }
  0xe7   :  { %743 = vmatpush3.bf16.msra.mxu0 %v533_v1  ;;  %763 = vmatpush3.bf16.msra.mxu1 %v573_v49  ;;  %v855_v28 = vunpack.i.h.bf16 %v851_v32  ;;  %v852_v39 = vunpack.i.l.bf16 %v851_v32 }
  0xe8   :  { %744 = vmatprep.subr.bf16.mxu0 %v1013_v44  ;;  %764 = vmatprep.subr.bf16.mxu1 %v1013_v44 }
  0xea   :  { %v856_v24 = vpop.trf.xlu0 }
  0xeb   :  { %v860_v50 = vunpack.i.h.bf16 %v856_v24  ;;  %v857_v12 = vunpack.i.l.bf16 %v856_v24 }
  0xed   :  { %v534_v6 = vpack.c.bf16 %v860_v50, %v855_v28  ;;  %v574_v46 = vpack.c.bf16 %v857_v12, %v852_v39 }
  0xee   :  { %v861_v21 = vpop.trf.xlu0 }
  0xef   :  { %745 = vmatpush3.bf16.msra.mxu0 %v534_v6  ;;  %765 = vmatpush3.bf16.msra.mxu1 %v574_v46  ;;  %v865_v9 = vunpack.i.h.bf16 %v861_v21  ;;  %v862_v45 = vunpack.i.l.bf16 %v861_v21 }
  0xf0   :  { %746 = vmatprep.subr.bf16.mxu0 %v1013_v44  ;;  %766 = vmatprep.subr.bf16.mxu1 %v1013_v44 }
  0xf2   :  { %v866_v57 = vpop.trf.xlu0 }
  0xf3   :  { %v870_v53 = vunpack.i.h.bf16 %v866_v57  ;;  %v867_v16 = vunpack.i.l.bf16 %v866_v57 }
  0xf5   :  { %v535_v38 = vpack.c.bf16 %v870_v53, %v865_v9  ;;  %v575_v58 = vpack.c.bf16 %v867_v16, %v862_v45 }
  0xf6   :  { %v871_v43 = vpop.trf.xlu0 }
  0xf7   :  { %747 = vmatpush3.bf16.msra.mxu0 %v535_v38  ;;  %767 = vmatpush3.bf16.msra.mxu1 %v575_v58  ;;  %v875_v11 = vunpack.i.h.bf16 %v871_v43  ;;  %v872_v31 = vunpack.i.l.bf16 %v871_v43 }
  0xf8   :  { %748 = vmatprep.subr.bf16.mxu0 %v1013_v44  ;;  %768 = vmatprep.subr.bf16.mxu1 %v1013_v44 }
  0xfa   :  { %v876_v25 = vpop.trf.xlu0 }
  0xfb   :  { %v880_v23 = vunpack.i.h.bf16 %v876_v25  ;;  %v877_v2 = vunpack.i.l.bf16 %v876_v25 }
  0xfd   :  { %v536_v55 = vpack.c.bf16 %v880_v23, %v875_v11  ;;  %v576_v36 = vpack.c.bf16 %v877_v2, %v872_v31 }
  0xfe   :  { %v881_v33 = vpop.trf.xlu0 }
  0xff   :  { %749 = vmatpush3.bf16.msra.mxu0 %v536_v55  ;;  %769 = vmatpush3.bf16.msra.mxu1 %v576_v36  ;;  %v885_v62 = vunpack.i.h.bf16 %v881_v33  ;;  %v882_v51 = vunpack.i.l.bf16 %v881_v33 }
 0x100   :  { %750 = vmatprep.subr.bf16.mxu0 %v1013_v44  ;;  %770 = vmatprep.subr.bf16.mxu1 %v1013_v44 }
 0x102   :  { %v886_v61 = vpop.trf.xlu0 }
 0x103   :  { %v890_v41 = vunpack.i.h.bf16 %v886_v61  ;;  %v887_v10 = vunpack.i.l.bf16 %v886_v61 }
 0x105   :  { %v537_v47 = vpack.c.bf16 %v890_v41, %v885_v62  ;;  %v577_v27 = vpack.c.bf16 %v887_v10, %v882_v51 }
 0x107   :  { %751 = vmatpush3.bf16.msra.mxu0 %v537_v47  ;;  %771 = vmatpush3.bf16.msra.mxu1 %v577_v27 }
 0x10a   :  { %773 = vmatmul.mubr.bf16.vlgmr.msra.gmra.mrb[0].mxu1 %v581_v19  ;;  %753 = vmatmul.mubr.bf16.vlgmr.msra.gmra.mrb[0].mxu0 %v578_v56 }
 0x1dd   :  { %v660_v18 = vpop.f32.mrb[0].mxu1  ;;  %v617_v13 = vpop.f32.mrb[0].mxu0 }
 0x1de   :  { %v688_v44 = vadd.f32 %v717_v42, %v660_v18  ;;  %v774_v48 = vpop.f32.mrb[1].mxu1  ;;  %v754_v29 = vpop.f32.mrb[1].mxu0  ;;  %v679_v60 = vadd.f32 %v716_v34, %v617_v13 }
 0x1df   :  { %v663_v8 = vpop.f32.mrb[2].mxu1  ;;  %v620_v40 = vpop.f32.mrb[2].mxu0 }
 0x1e0   :  { %v689_v20 = vmax.f32 %v688_v44, 0.0  ;;  %v775_v52 = vpop.f32.mrb[3].mxu1  ;;  %v755_v0 = vpop.f32.mrb[3].mxu0 }
 0x1e2   :  { %987 = vrsqrt.f32 %v689_v20  ;;  %vm692_vm1 = vcmp.eq.f32.partialorder %v689_v20, inf  ;;  %v695_v54 = vand.u32 2147483648, %v689_v20  ;;  %vm694_vm2 = vcmp.eq.f32.partialorder %v689_v20, 0.0 }
 0x1ec   :  { %v988_v5 = vpop.eup %987 }
 0x1ed   :  { %v691_v63 = vmul.f32 %v988_v5, %v689_v20 }
 0x1ef   :  { %v693_v59 = vsel %vm692_vm1, %v689_v20, %v691_v63 }
 0x1f0   :  { %v696_v14 = vsel %vm694_vm2, %v695_v54, %v693_v59 }
 0x1f1   :  { %v699_v37 = vmul.f32 %v698_v3, %v696_v14 }
 0x1f3   :  { %v700_v35 = vadd.f32 %v699_v37, %v679_v60 }
 0x1f5   :  { %701 = vst [vmem:[#allocation4] sm:$0xff] %v700_v35 }
 0x1f6   :  { %1000 = shalt.err (!%p997_p4)
}
 0x1f7   :  { %s1001_s11 = scalar_lea.hbm %s1545_s7, 128 }
 0x1f8   :  { %p1002_p5 = scmp.ne.s32.totalorder %s1545_s7, %s1001_s11  ;;  %p1005_p6 = scmp.lt.u32.totalorder %s1001_s11, %s1545_s7 }
 0x1fa   :  { %p1007_p7 = pnand %p1005_p6, %p1002_p5 }
 0x1fc   :  { %1010 = shalt.err (!%p1007_p7)
}
 0x1fd   :  { %711 = dma.vmem_to_hbm [thread:$0]  %s709_s9, 128, %s1545_s7, [#allocation5]  }
 0x1fe   :  { %1011 = dma.done.wait [#allocation5], 128  }
 0x1ff   :  { %1012 = vsyncadd [#allocation5], 4294967168 }
 0x200   :  { %715 = vsyncpa [#allocation5], 1 }

</bundles_post_ra>
